<compile_context>
chip_gen: v6e
topology: v6e:2x2x1
jax: 0.10.0
libtpu: 0.0.40
codegen_flags: <defaults>
</compile_context>

<pallas_src>
import functools

import jax
import jax.numpy as jnp
from jax.experimental import pallas as pl
from jax.experimental.pallas import tpu as pltpu


def _round_up(x, m):
    return ((x + m - 1) // m) * m


def moe_kernel(vit_ref, rc_ref, sv_ref, bv_ref, out_ref, *, gate_col):
    """One (batch, seq-tile) step.

    vit_ref: (tm, Dv) vit activations.
    rc_ref:  (1, ncols) precomputed cnn-stream row for this batch index
             (expert_cnn output in cols [0:Dout], differenced gate logit +
              gate bias in col gate_col, zeros elsewhere).
    sv_ref:  (Dv, ncols) packed vit weight slab (expert Wv | gate diff col | 0).
    bv_ref:  (1, ncols) vit bias slab (expert bias | 0 ...).
    """
    # Single lane-dense MXU pass: expert output and the gate logit ride in the
    # same result.  Native-dtype operands, f32 accumulation.
    rv = jnp.dot(vit_ref[...], sv_ref[...],
                 preferred_element_type=jnp.float32) + bv_ref[...]     # (tm, ncols)
    rc = rc_ref[...].astype(jnp.float32)                               # (1, ncols)

    # Two-expert softmax == sigmoid of the logit difference (exact for E == 2).
    g = rv[:, gate_col:gate_col + 1] + rc[:, gate_col:gate_col + 1]    # (tm, 1)
    gw_vit = jax.nn.sigmoid(g)                                         # EUP

    # fused = gw_vit * expert_vit + (1 - gw_vit) * expert_cnn  (pad / gate cols
    # carry garbage and are sliced off / ignored by the consumer).
    out = gw_vit * rv + (1.0 - gw_vit) * rc                            # (tm, ncols)
    out_ref[...] = out.astype(out_ref.dtype)


def pack_fusion_moe_params(params, *, compute_dtype=None):
    """Pack FusionMoe Linear weights into lane-dense slabs.  Call ONCE at load time."""
    wv, bv = params["wv"], params["bv"]          # (Dv, Dout), (1, Dout)
    wc, bc = params["wc"], params["bc"]          # (Dc, Dout), (1, Dout)
    wgv, wgc, bg = params["wgv"], params["wgc"], params["bg"]   # (Dv,2),(Dc,2),(1,2)

    # The PyTorch forward stacks exactly [expert_vit, expert_cnn]; the
    # sigmoid-of-difference gate rewrite is only exact for two experts.
    assert wgv.shape[-1] == 2, "FusionMoe forward uses exactly two experts (vit, cnn)."

    Dout = wv.shape[-1]
    cdt = compute_dtype if compute_dtype is not None else wv.dtype
    # Lane-dense N: expert cols [0:Dout], pre-differenced gate col at Dout,
    # zero pad to a 128-lane multiple.
    ncols = _round_up(Dout + 1, 128)

    def slab(w_expert, w_gate):
        gcol = (w_gate[:, 0] - w_gate[:, 1])[:, None]
        zpad = jnp.zeros((w_expert.shape[0], ncols - Dout - 1), w_expert.dtype)
        return jnp.concatenate([w_expert, gcol, zpad], axis=1).astype(cdt)

    slab_v = slab(wv, wgv)                                             # (Dv, ncols)
    slab_c = slab(wc, wgc)                                             # (Dc, ncols)
    # Expert biases in cols [0:Dout]; gate bias (differenced) lives only in the
    # cnn slab so it is added exactly once.  Biases kept in f32 (tiny).
    bias_v = jnp.concatenate(
        [bv, jnp.zeros((1, ncols - Dout), bv.dtype)], axis=1).astype(jnp.float32)
    bias_c = jnp.concatenate(
        [bc, bg[:, 0:1] - bg[:, 1:2], jnp.zeros((1, ncols - Dout - 1), bc.dtype)],
        axis=1).astype(jnp.float32)

    return dict(slab_v=slab_v, slab_c=slab_c, bias_v=bias_v, bias_c=bias_c,
                dout=Dout, ncols=ncols, compute_dtype=cdt)


def fusion_moe(vit_features, cnn_features, packed, *, tm=512):
    """vit_features (B, S, Dv), cnn_features (B, Dc) -> (B, S, Dout)."""
    B, S, Dv = vit_features.shape
    Dout, ncols = packed["dout"], packed["ncols"]
    cdt = packed["compute_dtype"]

    # Hoisted cnn stream: one (B, ncols) matmul per call in plain XLA (B rows
    # only).  Re-issuing this M=1 matmul per seq tile inside the kernel would
    # waste an MXU fill/drain for identical results and keep slab_c in VMEM.
    rc = (cnn_features.astype(cdt) @ packed["slab_c"]).astype(jnp.float32) \
        + packed["bias_c"]
    rc = rc[:, None, :]                                                # (B, 1, ncols)

    itemsize = jnp.dtype(cdt).itemsize
    sub = 16 if itemsize == 2 else 8                     # sublane packing for bf16
    tm_s = min(_round_up(max(tm, sub), sub), _round_up(S, sub))
    n_s = pl.cdiv(S, tm_s)
    # Note (v7x): grid size B * n_s should be >= 2 so both TensorCores get work.

    vit = vit_features.astype(cdt)
    out_itemsize = jnp.dtype(vit_features.dtype).itemsize

    # Explicit VMEM budget: double-buffered streamed tiles + constants, with
    # headroom, capped at the smallest physical VMEM across generations (64 MiB).
    vmem_est = (2 * tm_s * Dv * itemsize                 # vit tiles
                + 2 * tm_s * ncols * out_itemsize        # out tiles
                + 2 * ncols * 4                          # rc rows
                + 2 * (Dv * ncols * itemsize + ncols * 4))   # slab + bias
    vmem_limit = int(min(max(2 * vmem_est + (2 << 20), 16 << 20), 64 << 20))

    kernel = functools.partial(moe_kernel, gate_col=Dout)

    def build(single_buffer_consts):
        cmode = dict(pipeline_mode=pl.Buffered(1)) if single_buffer_consts else {}
        in_specs = [
            pl.BlockSpec((None, tm_s, Dv), lambda b, s: (b, s, 0)),     # vit row tile
            pl.BlockSpec((None, 1, ncols), lambda b, s: (b, 0, 0)),     # cnn row (per batch)
            pl.BlockSpec((Dv, ncols), lambda b, s: (0, 0), **cmode),    # weight slab
            pl.BlockSpec((1, ncols), lambda b, s: (0, 0), **cmode),     # bias slab
        ]
        return pl.pallas_call(
            kernel,
            out_shape=jax.ShapeDtypeStruct((B, S, ncols), vit_features.dtype),
            grid=(B, n_s),
            in_specs=in_specs,
            out_specs=pl.BlockSpec((None, tm_s, ncols), lambda b, s: (b, s, 0)),
            compiler_params=pltpu.CompilerParams(
                dimension_semantics=("parallel", "parallel"),
                vmem_limit_bytes=vmem_limit),
        )

    try:
        # Constants single-buffered (their index_map never changes).
        out = build(True)(vit, rc, packed["slab_v"], packed["bias_v"])
    except Exception:
        # Fallback: default double-buffering if Buffered(1) is rejected.
        out = build(False)(vit, rc, packed["slab_v"], packed["bias_v"])

    # TODO(synk): if the consumer can read the lane-padded (B, S, ncols) buffer
    # directly, skip this slice to avoid a possible extra HBM read+write.
    return out[..., :Dout] if ncols != Dout else out


def reference(vit_features, cnn_features, params):
    B, S, Dv = vit_features.shape
    Dc = cnn_features.shape[-1]
    cnn_exp = jnp.broadcast_to(cnn_features[:, None, :], (B, S, Dc))
    evit = vit_features @ params["wv"] + params["bv"]
    ecnn = cnn_exp @ params["wc"] + params["bc"]
    gate = vit_features @ params["wgv"] + cnn_exp @ params["wgc"] + params["bg"]
    gw = jax.nn.softmax(gate, axis=-1)
    expert_outputs = jnp.stack([evit, ecnn], axis=1)                   # (B, 2, S, Dout)
    return jnp.einsum("bisk,bsi->bsk", expert_outputs, gw)


if __name__ == "__main__":
    # Small shapes consistent with the module (num_experts=2 as the forward implies).
    B, S = 2, 8
    Dv, Dc, Dout, E = 32, 16, 64, 2

    key = jax.random.PRNGKey(0)
    ks = jax.random.split(key, 10)

    vit_features = jax.random.normal(ks[0], (B, S, Dv), jnp.float32)
    cnn_features = jax.random.normal(ks[1], (B, Dc), jnp.float32)

    # Parameters stored as (in, out); biases as (1, out). y = x @ W + b.
    scale = 0.05
    params = {
        "wv":  scale * jax.random.normal(ks[2], (Dv, Dout), jnp.float32),
        "bv":  scale * jax.random.normal(ks[3], (1, Dout), jnp.float32),
        "wc":  scale * jax.random.normal(ks[4], (Dc, Dout), jnp.float32),
        "bc":  scale * jax.random.normal(ks[5], (1, Dout), jnp.float32),
        "wgv": scale * jax.random.normal(ks[6], (Dv, E), jnp.float32),
        "wgc": scale * jax.random.normal(ks[7], (Dc, E), jnp.float32),
        "bg":  scale * jax.random.normal(ks[8], (1, E), jnp.float32),
    }

    # Pack once at "load time".  (Pass compute_dtype=jnp.bfloat16 for bf16 MXU
    # operands in production; kept f32 here to match the f32 reference to 1e-5.)
    packed = pack_fusion_moe_params(params)

    out = fusion_moe(vit_features, cnn_features, packed)
    jax.block_until_ready(out)

    ref = reference(vit_features, cnn_features, params)
    assert out.shape == (B, S, Dout)
    assert jnp.allclose(out, ref, atol=1e-5, rtol=1e-5), float(jnp.max(jnp.abs(out - ref)))

    print("KERNEL_OK")
</pallas_src>

<mosaic_0001>
module attributes {stable_mosaic.version = 11 : i64} {
  func.func @moe_kernel(%arg0: i32, %arg1: i32, %arg2: memref<1x8x32xf32, #tpu.memory_space<vmem>>, %arg3: memref<1x1x128xf32, #tpu.memory_space<vmem>>, %arg4: memref<32x128xf32, #tpu.memory_space<vmem>>, %arg5: memref<1x128xf32, #tpu.memory_space<vmem>>, %arg6: memref<1x8x128xf32, #tpu.memory_space<vmem>>) attributes {dimension_semantics = [#tpu.dimension_semantics<parallel>, #tpu.dimension_semantics<parallel>], iteration_bounds = array<i64: 2, 1>, scalar_prefetch = 0 : i64, scratch_operands = 0 : i64, tpu.core_type = #tpu.core_type<tc>, window_params = [{transform_indices = @transform_0, window_bounds = array<i64: 1, 8, 32>}, {transform_indices = @transform_1, window_bounds = array<i64: 1, 1, 128>}, {pipeline_mode = #tpu.pipeline_mode<synchronous>, transform_indices = @transform_2, window_bounds = array<i64: 32, 128>}, {pipeline_mode = #tpu.pipeline_mode<synchronous>, transform_indices = @transform_3, window_bounds = array<i64: 1, 128>}, {transform_indices = @transform_4, window_bounds = array<i64: 1, 8, 128>}]} {
    %c0 = arith.constant 0 : index
    %c0_0 = arith.constant 0 : index
    %c0_1 = arith.constant 0 : index
    %0 = vector.load %arg2[%c0, %c0_0, %c0_1] : memref<1x8x32xf32, #tpu.memory_space<vmem>>, vector<1x8x32xf32>
    %1 = vector.shape_cast %0 : vector<1x8x32xf32> to vector<8x32xf32>
    %c0_2 = arith.constant 0 : index
    %c0_3 = arith.constant 0 : index
    %2 = vector.load %arg4[%c0_2, %c0_3] : memref<32x128xf32, #tpu.memory_space<vmem>>, vector<32x128xf32>
    %cst = arith.constant dense<0.000000e+00> : vector<8x128xf32>
    %3 = tpu.matmul %1, %2, %cst {dimension_numbers = #tpu.dot_dimension_numbers<[1], [0], [0], [1], [0, 0, 1, 1], [], []>} : vector<8x32xf32>, vector<32x128xf32>, vector<8x128xf32> -> vector<8x128xf32>
    %c0_4 = arith.constant 0 : index
    %c0_5 = arith.constant 0 : index
    %4 = vector.load %arg5[%c0_4, %c0_5] : memref<1x128xf32, #tpu.memory_space<vmem>>, vector<1x128xf32>
    %5 = vector.broadcast %4 : vector<1x128xf32> to vector<8x128xf32>
    %6 = arith.addf %3, %5 : vector<8x128xf32>
    %c0_6 = arith.constant 0 : index
    %c0_7 = arith.constant 0 : index
    %c0_8 = arith.constant 0 : index
    %7 = vector.load %arg3[%c0_6, %c0_7, %c0_8] : memref<1x1x128xf32, #tpu.memory_space<vmem>>, vector<1x1x128xf32>
    %8 = vector.shape_cast %7 : vector<1x1x128xf32> to vector<1x128xf32>
    %9 = vector.extract_strided_slice %6 {offsets = [0, 64], sizes = [8, 1], strides = [1, 1]} : vector<8x128xf32> to vector<8x1xf32>
    %10 = vector.extract_strided_slice %8 {offsets = [0, 64], sizes = [1, 1], strides = [1, 1]} : vector<1x128xf32> to vector<1x1xf32>
    %11 = vector.broadcast %10 : vector<1x1xf32> to vector<8x1xf32>
    %12 = arith.addf %9, %11 : vector<8x1xf32>
    %13 = arith.negf %12 : vector<8x1xf32>
    %14 = math.exp %13 : vector<8x1xf32>
    %cst_9 = arith.constant 1.000000e+00 : f32
    %15 = vector.broadcast %cst_9 : f32 to vector<8x1xf32>
    %16 = arith.addf %15, %14 : vector<8x1xf32>
    %17 = arith.divf %15, %16 : vector<8x1xf32>
    %18 = vector.broadcast %17 : vector<8x1xf32> to vector<8x128xf32>
    %19 = arith.mulf %18, %6 : vector<8x128xf32>
    %cst_10 = arith.constant 1.000000e+00 : f32
    %20 = vector.broadcast %cst_10 : f32 to vector<8x1xf32>
    %21 = arith.subf %20, %17 : vector<8x1xf32>
    %22 = vector.broadcast %21 : vector<8x1xf32> to vector<8x128xf32>
    %23 = vector.broadcast %8 : vector<1x128xf32> to vector<8x128xf32>
    %24 = arith.mulf %22, %23 : vector<8x128xf32>
    %25 = arith.addf %19, %24 : vector<8x128xf32>
    %c0_11 = arith.constant 0 : index
    %c0_12 = arith.constant 0 : index
    %c0_13 = arith.constant 0 : index
    %26 = vector.load %arg6[%c0_11, %c0_12, %c0_13] : memref<1x8x128xf32, #tpu.memory_space<vmem>>, vector<1x8x128xf32>
    %27 = vector.shape_cast %26 : vector<1x8x128xf32> to vector<8x128xf32>
    %28 = vector.shape_cast %25 : vector<8x128xf32> to vector<1x8x128xf32>
    tpu.vector_store %arg6[%c0_11, %c0_12, %c0_13], %28 {strides = array<i32>} : memref<1x8x128xf32, #tpu.memory_space<vmem>>, vector<1x8x128xf32>,
    return
  }
  func.func @transform_0(%arg0: i32, %arg1: i32) -> (i32, i32, i32) {
    %c0_i32 = arith.constant 0 : i32
    %c0_i32_0 = arith.constant 0 : i32
    return %arg0, %arg1, %c0_i32 : i32, i32, i32
  }
  func.func @transform_1(%arg0: i32, %arg1: i32) -> (i32, i32, i32) {
    %c0_i32 = arith.constant 0 : i32
    %c0_i32_0 = arith.constant 0 : i32
    %c0_i32_1 = arith.constant 0 : i32
    return %arg0, %c0_i32, %c0_i32_0 : i32, i32, i32
  }
  func.func @transform_2(%arg0: i32, %arg1: i32) -> (i32, i32) {
    %c0_i32 = arith.constant 0 : i32
    %c0_i32_0 = arith.constant 0 : i32
    %c0_i32_1 = arith.constant 0 : i32
    return %c0_i32, %c0_i32_0 : i32, i32
  }
  func.func @transform_3(%arg0: i32, %arg1: i32) -> (i32, i32) {
    %c0_i32 = arith.constant 0 : i32
    %c0_i32_0 = arith.constant 0 : i32
    %c0_i32_1 = arith.constant 0 : i32
    return %c0_i32, %c0_i32_0 : i32, i32
  }
  func.func @transform_4(%arg0: i32, %arg1: i32) -> (i32, i32, i32) {
    %c0_i32 = arith.constant 0 : i32
    %c0_i32_0 = arith.constant 0 : i32
    return %arg0, %arg1, %c0_i32 : i32, i32, i32
  }
}

module attributes {stable_mosaic.version = 11 : i64} {
  func.func @moe_kernel(%arg0: i32, %arg1: i32, %arg2: memref<1x8x32xf32, #tpu.memory_space<vmem>>, %arg3: memref<1x1x128xf32, #tpu.memory_space<vmem>>, %arg4: memref<32x128xf32, #tpu.memory_space<vmem>>, %arg5: memref<1x128xf32, #tpu.memory_space<vmem>>, %arg6: memref<1x8x128xf32, #tpu.memory_space<vmem>>) attributes {dimension_semantics = [#tpu.dimension_semantics<parallel>, #tpu.dimension_semantics<parallel>], iteration_bounds = array<i64: 2, 1>, scalar_prefetch = 0 : i64, scratch_operands = 0 : i64, tpu.core_type = #tpu.core_type<tc>, window_params = [{transform_indices = @transform_0, window_bounds = array<i64: 1, 8, 32>}, {transform_indices = @transform_1, window_bounds = array<i64: 1, 1, 128>}, {pipeline_mode = #tpu.pipeline_mode<synchronous>, transform_indices = @transform_2, window_bounds = array<i64: 32, 128>}, {pipeline_mode = #tpu.pipeline_mode<synchronous>, transform_indices = @transform_3, window_bounds = array<i64: 1, 128>}, {transform_indices = @transform_4, window_bounds = array<i64: 1, 8, 128>}]} {
    %c0 = arith.constant 0 : index
    %c0_0 = arith.constant 0 : index
    %c0_1 = arith.constant 0 : index
    %0 = vector.load %arg2[%c0, %c0_0, %c0_1] : memref<1x8x32xf32, #tpu.memory_space<vmem>>, vector<1x8x32xf32>
    %1 = vector.shape_cast %0 : vector<1x8x32xf32> to vector<8x32xf32>
    %c0_2 = arith.constant 0 : index
    %c0_3 = arith.constant 0 : index
    %2 = vector.load %arg4[%c0_2, %c0_3] : memref<32x128xf32, #tpu.memory_space<vmem>>, vector<32x128xf32>
    %cst = arith.constant dense<0.000000e+00> : vector<8x128xf32>
    %3 = tpu.matmul %1, %2, %cst {dimension_numbers = #tpu.dot_dimension_numbers<[1], [0], [0], [1], [0, 0, 1, 1], [], []>} : vector<8x32xf32>, vector<32x128xf32>, vector<8x128xf32> -> vector<8x128xf32>
    %c0_4 = arith.constant 0 : index
    %c0_5 = arith.constant 0 : index
    %4 = vector.load %arg5[%c0_4, %c0_5] : memref<1x128xf32, #tpu.memory_space<vmem>>, vector<1x128xf32>
    %5 = vector.broadcast %4 : vector<1x128xf32> to vector<8x128xf32>
    %6 = arith.addf %3, %5 : vector<8x128xf32>
    %c0_6 = arith.constant 0 : index
    %c0_7 = arith.constant 0 : index
    %c0_8 = arith.constant 0 : index
    %7 = vector.load %arg3[%c0_6, %c0_7, %c0_8] : memref<1x1x128xf32, #tpu.memory_space<vmem>>, vector<1x1x128xf32>
    %8 = vector.shape_cast %7 : vector<1x1x128xf32> to vector<1x128xf32>
    %9 = vector.extract_strided_slice %6 {offsets = [0, 64], sizes = [8, 1], strides = [1, 1]} : vector<8x128xf32> to vector<8x1xf32>
    %10 = vector.extract_strided_slice %8 {offsets = [0, 64], sizes = [1, 1], strides = [1, 1]} : vector<1x128xf32> to vector<1x1xf32>
    %11 = vector.broadcast %10 : vector<1x1xf32> to vector<8x1xf32>
    %12 = arith.addf %9, %11 : vector<8x1xf32>
    %13 = arith.negf %12 : vector<8x1xf32>
    %14 = math.exp %13 : vector<8x1xf32>
    %cst_9 = arith.constant 1.000000e+00 : f32
    %15 = vector.broadcast %cst_9 : f32 to vector<8x1xf32>
    %16 = arith.addf %15, %14 : vector<8x1xf32>
    %17 = arith.divf %15, %16 : vector<8x1xf32>
    %18 = vector.broadcast %17 : vector<8x1xf32> to vector<8x128xf32>
    %19 = arith.mulf %18, %6 : vector<8x128xf32>
    %cst_10 = arith.constant 1.000000e+00 : f32
    %20 = vector.broadcast %cst_10 : f32 to vector<8x1xf32>
    %21 = arith.subf %20, %17 : vector<8x1xf32>
    %22 = vector.broadcast %21 : vector<8x1xf32> to vector<8x128xf32>
    %23 = vector.broadcast %8 : vector<1x128xf32> to vector<8x128xf32>
    %24 = arith.mulf %22, %23 : vector<8x128xf32>
    %25 = arith.addf %19, %24 : vector<8x128xf32>
    %c0_11 = arith.constant 0 : index
    %c0_12 = arith.constant 0 : index
    %c0_13 = arith.constant 0 : index
    %26 = vector.load %arg6[%c0_11, %c0_12, %c0_13] : memref<1x8x128xf32, #tpu.memory_space<vmem>>, vector<1x8x128xf32>
    %27 = vector.shape_cast %26 : vector<1x8x128xf32> to vector<8x128xf32>
    %28 = vector.shape_cast %25 : vector<8x128xf32> to vector<1x8x128xf32>
    tpu.vector_store %arg6[%c0_11, %c0_12, %c0_13], %28 {strides = array<i32>} : memref<1x8x128xf32, #tpu.memory_space<vmem>>, vector<1x8x128xf32>,
    return
  }
  func.func @transform_0(%arg0: i32, %arg1: i32) -> (i32, i32, i32) {
    %c0_i32 = arith.constant 0 : i32
    %c0_i32_0 = arith.constant 0 : i32
    return %arg0, %arg1, %c0_i32 : i32, i32, i32
  }
  func.func @transform_1(%arg0: i32, %arg1: i32) -> (i32, i32, i32) {
    %c0_i32 = arith.constant 0 : i32
    %c0_i32_0 = arith.constant 0 : i32
    %c0_i32_1 = arith.constant 0 : i32
    return %arg0, %c0_i32, %c0_i32_0 : i32, i32, i32
  }
  func.func @transform_2(%arg0: i32, %arg1: i32) -> (i32, i32) {
    %c0_i32 = arith.constant 0 : i32
    %c0_i32_0 = arith.constant 0 : i32
    %c0_i32_1 = arith.constant 0 : i32
    return %c0_i32, %c0_i32_0 : i32, i32
  }
  func.func @transform_3(%arg0: i32, %arg1: i32) -> (i32, i32) {
    %c0_i32 = arith.constant 0 : i32
    %c0_i32_0 = arith.constant 0 : i32
    %c0_i32_1 = arith.constant 0 : i32
    return %c0_i32, %c0_i32_0 : i32, i32
  }
  func.func @transform_4(%arg0: i32, %arg1: i32) -> (i32, i32, i32) {
    %c0_i32 = arith.constant 0 : i32
    %c0_i32_0 = arith.constant 0 : i32
    return %arg0, %arg1, %c0_i32 : i32, i32, i32
  }
}

</mosaic_0001>

<bundles_post_ra>
// kernel: tpu_custom_call.1
= control target key start
LH: loop header
LB: loop body
LE: loop exit
PB: predicated region body
PF: predicated region fallthrough
CT: control target
= control target key end

     0   :  { %s1036_s0 = inlined_call_operand.hbm [shape: f32[2,8,32], index: 0, kind: input, shape index: {}]   ;;  %s1037_s1 = inlined_call_operand.hbm [shape: f32[2,1,128], index: 1, kind: input, shape index: {}]   ;;  %s1038_s2 = inlined_call_operand.hbm [shape: f32[32,128], index: 2, kind: input, shape index: {}]   ;;  %s1039_s3 = inlined_call_operand.vmem [shape: f32[1,128], index: 3, kind: input, shape index: {}]   ;;  %s1040_s4 = inlined_call_operand.hbm [shape: f32[2,8,128], index: 4, kind: output, shape index: {}]  }
   0x1   :  { %1042 = sst [smem:[#allocation15_spill]] %s1036_s0 }
   0x2   :  { %1043 = sst [smem:[#allocation16_spill]] %s1038_s2 }
   0x3   :  { %9 = vsyncpa [#allocation3], 0 }
   0x4   :  { %11 = vsyncpa [#allocation3 + $0x1], 0 }
   0x5   :  { %12 = vsyncpa [#allocation6], 0 }
   0x6   :  { %14 = vsyncpa [#allocation6 + $0x1], 0 }
   0x7   :  { %15 = vsyncpa [#allocation4], 0 }
   0x8   :  { %17 = vsyncpa [#allocation4 + $0x1], 0  ;;  %s847_s15 = smov 0   ;;  %s849_s16 = smov 0  }
   0x9   :  { %s851_s17 = smov 0   ;;  %s853_s18 = smov 0  }
   0xa   :  { %s855_s19 = smov 0   ;;  %s857_s20 = smov 0  }
   0xb LB: > { %s878_s21 = sadd.s32 4294967295, %s811_s20   ;;  %s518_s22 = sadd.s32 4294967294, %s811_s20   ;;  %s811_s20 = sphi %s857_s20, %s23_s20   ;;  %s807_s19 = sphi %s855_s19, %s1063_s19   ;;  %s803_s18 = sphi %s853_s18, %s1062_s18   ;;  %s799_s17 = sphi %s851_s17, %s1061_s17   ;;  %s795_s16 = sphi %s849_s16, %s1060_s16   ;;  %s791_s15 = sphi %s847_s15, %s1059_s15  }
   0xc   : > { %p57_p0 = scmp.ne.s32.totalorder %s795_s16, %s791_s15  ;;  %p58_p1 = scmp.eq.s32.totalorder %s878_s21, 0 }
   0xd   : > { %p157_p3 = scmp.eq.s32.totalorder %s518_s22, 1  ;;  %p519_p5 = scmp.ge.s32.totalorder %s811_s20, 1 }
   0xe   : > { %p887_p4 = por %p58_p1, %p57_p0  ;;  %p164_p7 = scmp.lt.s32.totalorder %s811_s20, 3 }
   0xf   : > { %p892_p6 = por %p157_p3, %p57_p0  ;;  %s813_s26 = smov [#allocation7]  }
  0x10   : > { %p897_p8 = pnand %p519_p5, %p164_p7  ;;  %s176_s27 = sshll.u32 %s813_s26, 4  ;;  %s177_s27 = int_to_ptr.vmem [resolvable:$true] %s176_s27 }
  0x11   : > { %s1045_s24 = scalar_select %p892_p6, 1, 0 }
  0x12   : > { %p563_p9 = pneg %p897_p8  ;;  %p521_p10 = scmp.ge.s32.totalorder %s811_s20, 2 }
  0x13   : > { %s35_s29 = sadd.s32 1, %s807_s19  ;;  %s652_s30 = scalar_lea.vmem %s177_s27, 512 }
  0x14   : > { %p906_p11 = pnand %p563_p9, %p58_p1  ;;  %p653_p13 = scmp.ne.s32.totalorder %s177_s27, %s652_s30 }
  0x15   : > { %p660_p5 = scmp.lt.s32.totalorder %s177_s27, %s177_s27  ;;  %p661_p7 = scmp.lt.s32.totalorder %s652_s30, %s652_s30 }
  0x16   : > { %p643_p12 = pneg %p906_p11 }
  0x17   : > { %p662_p2 = por %p661_p7, %p660_p5 }
  0x18   : > { %p655_p0 = pnand %p653_p13, %p643_p12 }
  0x1a   : > { %p656_p3 = pneg %p655_p0 }
  0x1c   : > { %p663_p6 = pnand %p662_p2, %p656_p3 }
  0x1e   : > { %666 = shalt.err (!%p663_p6)
}
  0x1f   : > { %s814_s5 = smov 128   ;;  %s815_s6 = smov 8  }
  0x20   : > { %s1048_s2 = sld [smem:[#allocation16_spill]]  ;;  %p37_p2 = scmp.ge.s32.totalorder %s35_s29, 2 }
  0x21   : > { %s44_s9 = sadd.s32 1, %s799_s17  ;;  %p51_p6 = scmp.ne.s32.totalorder %s799_s17, %s795_s16 }
  0x22   : > { %p52_p9 = scmp.eq.s32.totalorder %s811_s20, 0  ;;  %s1065_s29 = smov (%p37_p2, %s35_s29), 0 }
  0x23   : > { %1049 = sst [smem:[#allocation13_spill]] %s1065_s29  ;;  %p1051_p13 = scmp.eq.s32.totalorder %s878_s21, 1 }
  0x24   : > { %p924_p12 = por %p52_p9, %p51_p6  ;;  %s39_s12 = ssub.s32 %s807_s19, %s1065_s29 }
  0x25   : > { %p930_p0 = por %p1051_p13, %p51_p6  ;;  %p42_p3 = scmp.eq.s32.totalorder %s39_s12, 0 }
  0x26   : > { %566 = dma.hbm_to_vmem [thread:$0]  (!%p906_p11), %s1048_s2, 512, %s177_s27, [#allocation6], %s814_s5, %s814_s5, %s815_s6  }
  0x27   : > { %p579_p11 = scmp.lt.s32.totalorder %s811_s20, 2  ;;  %s193_s13 = sand.u32 1, %s799_s17  }
  0x28   : > { %s522_s14 = sshll.u32 %s193_s13, 3  ;;  %s523_s26 = sshll.u32 %s807_s19, 7 }
  0x29   : > { %s939_s22 = scalar_select %p42_p3, %s799_s17, %s44_s9  }
  0x2a   : > { %s1054_s0 = sld [smem:[#allocation15_spill]]  ;;  %s197_s5 = scalar_lea.vmem [#allocation2], %s522_s14 }
  0x2b   : > { %1053 = sst [smem:[#allocation14_spill]] %s939_s22  ;;  %s205_s6 = sshll.u32 %s197_s5, 4  ;;  %s206_s6 = int_to_ptr.vmem [resolvable:$true] %s205_s6 }
  0x2c   : > { %p947_p5 = pnand %p579_p11, %p924_p12  ;;  %s212_s8 = sand.u32 1, %s811_s20  }
  0x2d   : > { %s194_s12 = scalar_lea.sflag [#allocation3], %s193_s13  ;;  %s680_s9 = scalar_lea.vmem %s206_s6, 128 }
  0x2e   : > { %p669_p7 = pneg %p947_p5  ;;  %p681_p2 = scmp.ne.s32.totalorder %s206_s6, %s680_s9 }
  0x2f   : > { %s816_s14 = smov [#allocation2]  }
  0x30   : > { %s203_s30 = scalar_lea.hbm %s1054_s0, %s523_s26  ;;  %p683_p6 = pnand %p681_p2, %p669_p7 }
  0x31   : > { %s685_s26 = sshll.u32 %s816_s14, 4  ;;  %s686_s26 = int_to_ptr.vmem [resolvable:$false] %s685_s26 }
  0x32   : > { %p684_p9 = pneg %p683_p6  ;;  %s687_s10 = scalar_lea.vmem %s686_s26, 256 }
  0x33   : > { %p688_p12 = scmp.lt.s32.totalorder %s206_s6, %s686_s26  ;;  %p689_p13 = scmp.lt.s32.totalorder %s687_s10, %s680_s9 }
  0x35   : > { %p690_p11 = por %p689_p13, %p688_p12 }
  0x37   : > { %p691_p3 = pnand %p690_p11, %p684_p9 }
  0x39   : > { %694 = shalt.err (!%p691_p3)
}
  0x3a   : > { %570 = dma.hbm_to_vmem [thread:$0]  (!%p947_p5), %s203_s30, 128, %s206_s6, %s194_s12  }
  0x3b   : > { %s524_s27 = sshll.u32 %s807_s19, 4  ;;  %s215_s28 = scalar_lea.vmem [#allocation5], %s193_s13 }
  0x3c   : > { %s222_s5 = sshll.u32 %s215_s28, 4  ;;  %s220_s29 = scalar_lea.hbm %s1037_s1, %s524_s27  ;;  %s223_s5 = int_to_ptr.vmem [resolvable:$true] %s222_s5 }
  0x3d   : > { %s213_s14 = scalar_lea.sflag [#allocation6], %s212_s8  ;;  %s708_s22 = scalar_lea.vmem %s223_s5, 16 }
  0x3e   : > { %p709_p2 = scmp.ne.s32.totalorder %s223_s5, %s708_s22  ;;  %s817_s9 = smov [#allocation5]  }
  0x3f   : > { %s713_s26 = sshll.u32 %s817_s9, 4  ;;  %s714_s26 = int_to_ptr.vmem [resolvable:$false] %s713_s26 }
  0x40   : > { %p711_p6 = pnand %p709_p2, %p669_p7  ;;  %s715_s10 = scalar_lea.vmem %s714_s26, 32 }
  0x41   : > { %p716_p12 = scmp.lt.s32.totalorder %s223_s5, %s714_s26  ;;  %p717_p13 = scmp.lt.s32.totalorder %s715_s10, %s708_s22 }
  0x42   : > { %p712_p9 = pneg %p711_p6 }
  0x43   : > { %p718_p11 = por %p717_p13, %p716_p12 }
  0x45   : > { %p719_p3 = pnand %p718_p11, %p712_p9 }
  0x47   : > { %722 = shalt.err (!%p719_p3)
}
  0x48   : > { %573 = dma.hbm_to_vmem [thread:$0]  (!%p947_p5), %s220_s29, 16, %s223_s5, %s213_s14  }
  0x49   : > { %231 = sbr.rel (%p897_p8) target bundleno = 467 (0x1d3), region = 36  ;;  %s971_s0 = sand.u32 (!%p897_p8), 1, %s795_s16  }
  0x4a   : > { %s526_s2 = sshll.u32 (!%p897_p8), %s971_s0, 3  ;;  %s234_s13 = scalar_lea.sflag (!%p897_p8), [#allocation3], %s971_s0 }
  0x4b   : > { %s237_s22 = scalar_lea.vmem (!%p897_p8), [#allocation2], %s526_s2 }
  0x4e   : > { %774 = dma.done.wait (%p887_p4), %s234_s13, 128  }
  0x4f   : > { %776 = vsyncadd (%p887_p4), %s234_s13, 4294967168  ;;  %s242_s25 = sand.u32 1, %s878_s21   ;;  %s245_s30 = scalar_lea.vmem [#allocation5], %s971_s0 }
  0x50   : > { %s243_s29 = scalar_lea.sflag [#allocation6], %s242_s25 }
  0x51   : > { %778 = dma.done.wait (%p887_p4), %s243_s29, 16  }
  0x52   : > { %780 = vsyncadd (%p887_p4), %s243_s29, 4294967280 }
  0x53   : > { %782 = dma.done.wait (%p58_p1), [#allocation6], 512  }
  0x54   : > { %784 = vsyncadd (%p58_p1), [#allocation6], 4294966784  ;;  %v818_v0 = vmov 0.0   ;;  %vm819_vm0 = vmmov 0   ;;  %v282_v1 = vld [vmem:[#allocation7 + $0x18] sm:$0xff]  ;;  %v281_v2 = vld [vmem:[#allocation7 + $0x10] sm:$0xff] }
  0x55   : > { %542 = vmatprep.subr.mxu0 %v818_v0  ;;  %550 = vmatprep.mubr.msk.f32.mxu0 %vm819_vm0, %v818_v0  ;;  %v280_v3 = vld [vmem:[#allocation7 + $0x8] sm:$0xff]  ;;  %v279_v4 = vld [vmem:[#allocation7] sm:$0xff]  ;;  %vm290_vm1 = vcmask 261120   ;;  %v820_v6 = vmov 64   ;;  %s534_s6 = sshll.u32 %s803_s18, 7  ;;  %s277_s7 = scalar_lea.vmem [#allocation8], %s526_s2 }
  0x56   : > { %543 = vmatpush3.msra.mxu0 %v282_v1  ;;  %v278_v5 = vld [vmem:[%s237_s22] sm:$0xff]  ;;  %636 = vset.pattern.permute.xlu0 %v820_v6  ;;  %s408_s8 = sshll.u32 %s277_s7, 4  ;;  %s406_s28 = scalar_lea.hbm %s1040_s4, %s534_s6  ;;  %s409_s8 = int_to_ptr.vmem [resolvable:$true] %s408_s8 }
  0x57   : > { %544 = vmatprep.subr.mxu0 %v818_v0  ;;  %v529_v7 = vld [vmem:[%s1039_s3] ss:$0 sm:$0xff]  ;;  %s394_s5 = scalar_lea.sflag [#allocation4], %s971_s0  ;;  %s723_s14 = scalar_lea.vmem %s409_s8, 128 }
  0x58   : > { %545 = vmatpush3.msra.mxu0 %v281_v2  ;;  %v531_v9 = vld [vmem:[%s245_s30] ss:$0 sm:$0xff]  ;;  %p724_p1 = scmp.ne.s32.totalorder %s409_s8, %s723_s14  ;;  %s821_s9 = smov [#allocation8]  }
  0x59   : > { %546 = vmatprep.subr.mxu0 %v818_v0  ;;  %s727_s18 = sshll.u32 %s821_s9, 4  ;;  %s728_s18 = int_to_ptr.vmem [resolvable:$false] %s727_s18 }
  0x5a   : > { %547 = vmatpush3.msra.mxu0 %v280_v3  ;;  %p725_p4 = pnand %p724_p1, %p930_p0  ;;  %s729_s26 = scalar_lea.vmem %s728_s18, 256 }
  0x5b   : > { %548 = vmatprep.subr.mxu0 %v818_v0  ;;  %p730_p5 = scmp.lt.s32.totalorder %s409_s8, %s728_s18  ;;  %p731_p7 = scmp.lt.s32.totalorder %s729_s26, %s723_s14 }
  0x5c   : > { %549 = vmatpush3.msra.mxu0 %v279_v4  ;;  %p726_p8 = pneg %p725_p4 }
  0x5d   : > { %551 = vmatmul.mubr.msk.f32.vlgmr.msra.gmra.mxu0 %vm290_vm1, %v278_v5  ;;  %p732_p2 = por %p731_p7, %p730_p5 }
  0x5f   : > { %p733_p6 = pnand %p732_p2, %p726_p8 }
 0x11d   : > { %v360_v8 = vpop.f32.mrf.mxu0 }
 0x11e   : > { %v361_v10 = vadd.f32 %v529_v7, %v360_v8 }
 0x11f   : > { %v552_v11 = vpop.f32.mrf.mxu0 }
 0x120   : > { %v371_v12 = vadd.f32 %v531_v9, %v361_v10 }
 0x122   : > { %v532_v13 = vmul.f32 -1.442695, %v371_v12 }
 0x124   : > { %637 = vpow2.f32 %v532_v13 }
 0x131   : > { %v638_v14 = vpop.eup %637 }
 0x132   : > { %v375_v15 = vadd.f32 1.0, %v638_v14 }
 0x134   : > { %639 = vrcp.f32 %v375_v15 }
 0x141   : > { %v640_v16 = vpop.eup %639 }
 0x142   : > { %380 = vperm.xlu0 %636, %v640_v16   ;;  %v384_v17 = vsub.f32 1.0, %v640_v16 }
 0x146   : > { %387 = vperm.xlu0 %636, %v384_v17  }
 0x1bd   : > { %v381_v18 = vpop.permute.xlu0 %380 }
 0x1be   : > { %v383_v20 = vmul.f32 %v381_v18, %v361_v10 }
 0x1c1   : > { %v388_v19 = vpop.permute.xlu0 %387 }
 0x1c2   : > { %v390_v21 = vmul.f32 %v531_v9, %v388_v19 }
 0x1c4   : > { %v391_v22 = vadd.f32 %v390_v21, %v383_v20 }
 0x1c6   : > { %392 = vst [vmem:[%s277_s7] sm:$0xff] %v391_v22 }
 0x1c7   : > { %736 = shalt.err (!%p733_p6)
}
 0x1c8   : > { %s737_s10 = scalar_lea.hbm %s406_s28, 128  ;;  %s741_s13 = scalar_lea.hbm %s1040_s4, 256 }
 0x1c9   : > { %p738_p9 = scmp.ne.s32.totalorder %s406_s28, %s737_s10  ;;  %p742_p11 = scmp.lt.s32.totalorder %s406_s28, %s1040_s4 }
 0x1ca   : > { %p743_p3 = scmp.lt.s32.totalorder %s741_s13, %s737_s10 }
 0x1cb   : > { %p739_p12 = pnand %p738_p9, %p930_p0 }
 0x1cc   : > { %p744_p1 = por %p743_p3, %p742_p11 }
 0x1cd   : > { %p740_p13 = pneg %p739_p12 }
 0x1cf   : > { %p745_p4 = pnand %p744_p1, %p740_p13 }
 0x1d1   : > { %748 = shalt.err (!%p745_p4)
}
 0x1d2   : > { %561 = dma.vmem_to_hbm [thread:$0]  (%p930_p0), %s409_s8, 128, %s406_s28, %s394_s5  }
 0x1d3 PF: > { %s420_s29 = sand.u32 1, %s791_s15   ;;  %p1056_p8 = scmp.ne.s32.totalorder %s1045_s24, 0 }
 0x1d4   : > { %s421_s30 = scalar_lea.sflag [#allocation4], %s420_s29 }
 0x1d5   : > { %p575_p5 = pnand %p521_p10, %p1056_p8 }
 0x1d7   : > { %p576_p7 = pneg %p575_p5 }
 0x1d9   : > { %786 = dma.done.wait (%p576_p7), %s421_s30, 128  }
 0x1da   : > { %788 = vsyncadd (%p576_p7), %s421_s30, 4294967168  ;;  %s23_s20 = sadd.s32 1, %s811_s20   ;;  %s1057_s21 = sld [smem:[#allocation14_spill]] }
 0x1db   : > { %p20_p2 = scmp.ge.s32.totalorder %s23_s20, 4   ;;  %s1058_s11 = sld [smem:[#allocation13_spill]] }
 0x1dc   : > { %s1059_s15 = smov %s795_s16  ;;  %s1060_s16 = smov %s799_s17 }
 0x1dd   : > { %s1062_s18 = smov %s807_s19  ;;  %22 = sbr.rel (!%p20_p2) target bundleno = 11 (0xb), region = 98 }
 0x1e0   : > { %s1061_s17 = smov %s1057_s21 }
 0x1e1   : > { %s1063_s19 = smov %s1058_s11 }
 0x1e2   :  { %426 = vsyncpa [#allocation3], 1 }
 0x1e3   :  { %428 = vsyncpa [#allocation3 + $0x1], 1 }
 0x1e4   :  { %429 = vsyncpa [#allocation6], 1 }
 0x1e5   :  { %431 = vsyncpa [#allocation6 + $0x1], 1 }
 0x1e6   :  { %432 = vsyncpa [#allocation4], 1 }
 0x1e7   :  { %434 = vsyncpa [#allocation4 + $0x1], 1 }

// kernel: tpu_custom_call.1
= control target key start
LH: loop header
LB: loop body
LE: loop exit
PB: predicated region body
PF: predicated region fallthrough
CT: control target
= control target key end

     0   :  { %s1036_s0 = inlined_call_operand.hbm [shape: f32[2,8,32], index: 0, kind: input, shape index: {}]   ;;  %s1037_s1 = inlined_call_operand.hbm [shape: f32[2,1,128], index: 1, kind: input, shape index: {}]   ;;  %s1038_s2 = inlined_call_operand.hbm [shape: f32[32,128], index: 2, kind: input, shape index: {}]   ;;  %s1039_s3 = inlined_call_operand.vmem [shape: f32[1,128], index: 3, kind: input, shape index: {}]   ;;  %s1040_s4 = inlined_call_operand.hbm [shape: f32[2,8,128], index: 4, kind: output, shape index: {}]  }
   0x1   :  { %1042 = sst [smem:[#allocation15_spill]] %s1036_s0 }
   0x2   :  { %1043 = sst [smem:[#allocation16_spill]] %s1038_s2 }
   0x3   :  { %9 = vsyncpa [#allocation3], 0 }
   0x4   :  { %11 = vsyncpa [#allocation3 + $0x1], 0 }
   0x5   :  { %12 = vsyncpa [#allocation6], 0 }
   0x6   :  { %14 = vsyncpa [#allocation6 + $0x1], 0 }
   0x7   :  { %15 = vsyncpa [#allocation4], 0 }
   0x8   :  { %17 = vsyncpa [#allocation4 + $0x1], 0  ;;  %s847_s15 = smov 0   ;;  %s849_s16 = smov 0  }
   0x9   :  { %s851_s17 = smov 0   ;;  %s853_s18 = smov 0  }
   0xa   :  { %s855_s19 = smov 0   ;;  %s857_s20 = smov 0  }
   0xb LB: > { %s878_s21 = sadd.s32 4294967295, %s811_s20   ;;  %s518_s22 = sadd.s32 4294967294, %s811_s20   ;;  %s811_s20 = sphi %s857_s20, %s23_s20   ;;  %s807_s19 = sphi %s855_s19, %s1063_s19   ;;  %s803_s18 = sphi %s853_s18, %s1062_s18   ;;  %s799_s17 = sphi %s851_s17, %s1061_s17   ;;  %s795_s16 = sphi %s849_s16, %s1060_s16   ;;  %s791_s15 = sphi %s847_s15, %s1059_s15  }
   0xc   : > { %p57_p0 = scmp.ne.s32.totalorder %s795_s16, %s791_s15  ;;  %p58_p1 = scmp.eq.s32.totalorder %s878_s21, 0 }
   0xd   : > { %p157_p3 = scmp.eq.s32.totalorder %s518_s22, 1  ;;  %p519_p5 = scmp.ge.s32.totalorder %s811_s20, 1 }
   0xe   : > { %p887_p4 = por %p58_p1, %p57_p0  ;;  %p164_p7 = scmp.lt.s32.totalorder %s811_s20, 3 }
   0xf   : > { %p892_p6 = por %p157_p3, %p57_p0  ;;  %s813_s26 = smov [#allocation7]  }
  0x10   : > { %p897_p8 = pnand %p519_p5, %p164_p7  ;;  %s176_s27 = sshll.u32 %s813_s26, 4  ;;  %s177_s27 = int_to_ptr.vmem [resolvable:$true] %s176_s27 }
  0x11   : > { %s1045_s24 = scalar_select %p892_p6, 1, 0 }
  0x12   : > { %p563_p9 = pneg %p897_p8  ;;  %p521_p10 = scmp.ge.s32.totalorder %s811_s20, 2 }
  0x13   : > { %s35_s29 = sadd.s32 1, %s807_s19  ;;  %s652_s30 = scalar_lea.vmem %s177_s27, 512 }
  0x14   : > { %p906_p11 = pnand %p563_p9, %p58_p1  ;;  %p653_p13 = scmp.ne.s32.totalorder %s177_s27, %s652_s30 }
  0x15   : > { %p660_p5 = scmp.lt.s32.totalorder %s177_s27, %s177_s27  ;;  %p661_p7 = scmp.lt.s32.totalorder %s652_s30, %s652_s30 }
  0x16   : > { %p643_p12 = pneg %p906_p11 }
  0x17   : > { %p662_p2 = por %p661_p7, %p660_p5 }
  0x18   : > { %p655_p0 = pnand %p653_p13, %p643_p12 }
  0x1a   : > { %p656_p3 = pneg %p655_p0 }
  0x1c   : > { %p663_p6 = pnand %p662_p2, %p656_p3 }
  0x1e   : > { %666 = shalt.err (!%p663_p6)
}
  0x1f   : > { %s814_s5 = smov 128   ;;  %s815_s6 = smov 8  }
  0x20   : > { %s1048_s2 = sld [smem:[#allocation16_spill]]  ;;  %p37_p2 = scmp.ge.s32.totalorder %s35_s29, 2 }
  0x21   : > { %s44_s9 = sadd.s32 1, %s799_s17  ;;  %p51_p6 = scmp.ne.s32.totalorder %s799_s17, %s795_s16 }
  0x22   : > { %p52_p9 = scmp.eq.s32.totalorder %s811_s20, 0  ;;  %s1065_s29 = smov (%p37_p2, %s35_s29), 0 }
  0x23   : > { %1049 = sst [smem:[#allocation13_spill]] %s1065_s29  ;;  %p1051_p13 = scmp.eq.s32.totalorder %s878_s21, 1 }
  0x24   : > { %p924_p12 = por %p52_p9, %p51_p6  ;;  %s39_s12 = ssub.s32 %s807_s19, %s1065_s29 }
  0x25   : > { %p930_p0 = por %p1051_p13, %p51_p6  ;;  %p42_p3 = scmp.eq.s32.totalorder %s39_s12, 0 }
  0x26   : > { %566 = dma.hbm_to_vmem [thread:$0]  (!%p906_p11), %s1048_s2, 512, %s177_s27, [#allocation6], %s814_s5, %s814_s5, %s815_s6  }
  0x27   : > { %p579_p11 = scmp.lt.s32.totalorder %s811_s20, 2  ;;  %s193_s13 = sand.u32 1, %s799_s17  }
  0x28   : > { %s522_s14 = sshll.u32 %s193_s13, 3  ;;  %s523_s26 = sshll.u32 %s807_s19, 7 }
  0x29   : > { %s939_s22 = scalar_select %p42_p3, %s799_s17, %s44_s9  }
  0x2a   : > { %s1054_s0 = sld [smem:[#allocation15_spill]]  ;;  %s197_s5 = scalar_lea.vmem [#allocation2], %s522_s14 }
  0x2b   : > { %1053 = sst [smem:[#allocation14_spill]] %s939_s22  ;;  %s205_s6 = sshll.u32 %s197_s5, 4  ;;  %s206_s6 = int_to_ptr.vmem [resolvable:$true] %s205_s6 }
  0x2c   : > { %p947_p5 = pnand %p579_p11, %p924_p12  ;;  %s212_s8 = sand.u32 1, %s811_s20  }
  0x2d   : > { %s194_s12 = scalar_lea.sflag [#allocation3], %s193_s13  ;;  %s680_s9 = scalar_lea.vmem %s206_s6, 128 }
  0x2e   : > { %p669_p7 = pneg %p947_p5  ;;  %p681_p2 = scmp.ne.s32.totalorder %s206_s6, %s680_s9 }
  0x2f   : > { %s816_s14 = smov [#allocation2]  }
  0x30   : > { %s203_s30 = scalar_lea.hbm %s1054_s0, %s523_s26  ;;  %p683_p6 = pnand %p681_p2, %p669_p7 }
  0x31   : > { %s685_s26 = sshll.u32 %s816_s14, 4  ;;  %s686_s26 = int_to_ptr.vmem [resolvable:$false] %s685_s26 }
  0x32   : > { %p684_p9 = pneg %p683_p6  ;;  %s687_s10 = scalar_lea.vmem %s686_s26, 256 }
  0x33   : > { %p688_p12 = scmp.lt.s32.totalorder %s206_s6, %s686_s26  ;;  %p689_p13 = scmp.lt.s32.totalorder %s687_s10, %s680_s9 }
  0x35   : > { %p690_p11 = por %p689_p13, %p688_p12 }
  0x37   : > { %p691_p3 = pnand %p690_p11, %p684_p9 }
  0x39   : > { %694 = shalt.err (!%p691_p3)
}
  0x3a   : > { %570 = dma.hbm_to_vmem [thread:$0]  (!%p947_p5), %s203_s30, 128, %s206_s6, %s194_s12  }
  0x3b   : > { %s524_s27 = sshll.u32 %s807_s19, 4  ;;  %s215_s28 = scalar_lea.vmem [#allocation5], %s193_s13 }
  0x3c   : > { %s222_s5 = sshll.u32 %s215_s28, 4  ;;  %s220_s29 = scalar_lea.hbm %s1037_s1, %s524_s27  ;;  %s223_s5 = int_to_ptr.vmem [resolvable:$true] %s222_s5 }
  0x3d   : > { %s213_s14 = scalar_lea.sflag [#allocation6], %s212_s8  ;;  %s708_s22 = scalar_lea.vmem %s223_s5, 16 }
  0x3e   : > { %p709_p2 = scmp.ne.s32.totalorder %s223_s5, %s708_s22  ;;  %s817_s9 = smov [#allocation5]  }
  0x3f   : > { %s713_s26 = sshll.u32 %s817_s9, 4  ;;  %s714_s26 = int_to_ptr.vmem [resolvable:$false] %s713_s26 }
  0x40   : > { %p711_p6 = pnand %p709_p2, %p669_p7  ;;  %s715_s10 = scalar_lea.vmem %s714_s26, 32 }
  0x41   : > { %p716_p12 = scmp.lt.s32.totalorder %s223_s5, %s714_s26  ;;  %p717_p13 = scmp.lt.s32.totalorder %s715_s10, %s708_s22 }
  0x42   : > { %p712_p9 = pneg %p711_p6 }
  0x43   : > { %p718_p11 = por %p717_p13, %p716_p12 }
  0x45   : > { %p719_p3 = pnand %p718_p11, %p712_p9 }
  0x47   : > { %722 = shalt.err (!%p719_p3)
}
  0x48   : > { %573 = dma.hbm_to_vmem [thread:$0]  (!%p947_p5), %s220_s29, 16, %s223_s5, %s213_s14  }
  0x49   : > { %231 = sbr.rel (%p897_p8) target bundleno = 467 (0x1d3), region = 36  ;;  %s971_s0 = sand.u32 (!%p897_p8), 1, %s795_s16  }
  0x4a   : > { %s526_s2 = sshll.u32 (!%p897_p8), %s971_s0, 3  ;;  %s234_s13 = scalar_lea.sflag (!%p897_p8), [#allocation3], %s971_s0 }
  0x4b   : > { %s237_s22 = scalar_lea.vmem (!%p897_p8), [#allocation2], %s526_s2 }
  0x4e   : > { %774 = dma.done.wait (%p887_p4), %s234_s13, 128  }
  0x4f   : > { %776 = vsyncadd (%p887_p4), %s234_s13, 4294967168  ;;  %s242_s25 = sand.u32 1, %s878_s21   ;;  %s245_s30 = scalar_lea.vmem [#allocation5], %s971_s0 }
  0x50   : > { %s243_s29 = scalar_lea.sflag [#allocation6], %s242_s25 }
  0x51   : > { %778 = dma.done.wait (%p887_p4), %s243_s29, 16  }
  0x52   : > { %780 = vsyncadd (%p887_p4), %s243_s29, 4294967280 }
  0x53   : > { %782 = dma.done.wait (%p58_p1), [#allocation6], 512  }
  0x54   : > { %784 = vsyncadd (%p58_p1), [#allocation6], 4294966784  ;;  %v818_v0 = vmov 0.0   ;;  %vm819_vm0 = vmmov 0   ;;  %v282_v1 = vld [vmem:[#allocation7 + $0x18] sm:$0xff]  ;;  %v281_v2 = vld [vmem:[#allocation7 + $0x10] sm:$0xff] }
  0x55   : > { %542 = vmatprep.subr.mxu0 %v818_v0  ;;  %550 = vmatprep.mubr.msk.f32.mxu0 %vm819_vm0, %v818_v0  ;;  %v280_v3 = vld [vmem:[#allocation7 + $0x8] sm:$0xff]  ;;  %v279_v4 = vld [vmem:[#allocation7] sm:$0xff]  ;;  %vm290_vm1 = vcmask 261120   ;;  %v820_v6 = vmov 64   ;;  %s534_s6 = sshll.u32 %s803_s18, 7  ;;  %s277_s7 = scalar_lea.vmem [#allocation8], %s526_s2 }
  0x56   : > { %543 = vmatpush3.msra.mxu0 %v282_v1  ;;  %v278_v5 = vld [vmem:[%s237_s22] sm:$0xff]  ;;  %636 = vset.pattern.permute.xlu0 %v820_v6  ;;  %s408_s8 = sshll.u32 %s277_s7, 4  ;;  %s406_s28 = scalar_lea.hbm %s1040_s4, %s534_s6  ;;  %s409_s8 = int_to_ptr.vmem [resolvable:$true] %s408_s8 }
  0x57   : > { %544 = vmatprep.subr.mxu0 %v818_v0  ;;  %v529_v7 = vld [vmem:[%s1039_s3] ss:$0 sm:$0xff]  ;;  %s394_s5 = scalar_lea.sflag [#allocation4], %s971_s0  ;;  %s723_s14 = scalar_lea.vmem %s409_s8, 128 }
  0x58   : > { %545 = vmatpush3.msra.mxu0 %v281_v2  ;;  %v531_v9 = vld [vmem:[%s245_s30] ss:$0 sm:$0xff]  ;;  %p724_p1 = scmp.ne.s32.totalorder %s409_s8, %s723_s14  ;;  %s821_s9 = smov [#allocation8]  }
  0x59   : > { %546 = vmatprep.subr.mxu0 %v818_v0  ;;  %s727_s18 = sshll.u32 %s821_s9, 4  ;;  %s728_s18 = int_to_ptr.vmem [resolvable:$false] %s727_s18 }
  0x5a   : > { %547 = vmatpush3.msra.mxu0 %v280_v3  ;;  %p725_p4 = pnand %p724_p1, %p930_p0  ;;  %s729_s26 = scalar_lea.vmem %s728_s18, 256 }
  0x5b   : > { %548 = vmatprep.subr.mxu0 %v818_v0  ;;  %p730_p5 = scmp.lt.s32.totalorder %s409_s8, %s728_s18  ;;  %p731_p7 = scmp.lt.s32.totalorder %s729_s26, %s723_s14 }
  0x5c   : > { %549 = vmatpush3.msra.mxu0 %v279_v4  ;;  %p726_p8 = pneg %p725_p4 }
  0x5d   : > { %551 = vmatmul.mubr.msk.f32.vlgmr.msra.gmra.mxu0 %vm290_vm1, %v278_v5  ;;  %p732_p2 = por %p731_p7, %p730_p5 }
  0x5f   : > { %p733_p6 = pnand %p732_p2, %p726_p8 }
 0x11d   : > { %v360_v8 = vpop.f32.mrf.mxu0 }
 0x11e   : > { %v361_v10 = vadd.f32 %v529_v7, %v360_v8 }
 0x11f   : > { %v552_v11 = vpop.f32.mrf.mxu0 }
 0x120   : > { %v371_v12 = vadd.f32 %v531_v9, %v361_v10 }
 0x122   : > { %v532_v13 = vmul.f32 -1.442695, %v371_v12 }
 0x124   : > { %637 = vpow2.f32 %v532_v13 }
 0x131   : > { %v638_v14 = vpop.eup %637 }
 0x132   : > { %v375_v15 = vadd.f32 1.0, %v638_v14 }
 0x134   : > { %639 = vrcp.f32 %v375_v15 }
 0x141   : > { %v640_v16 = vpop.eup %639 }
 0x142   : > { %380 = vperm.xlu0 %636, %v640_v16   ;;  %v384_v17 = vsub.f32 1.0, %v640_v16 }
 0x146   : > { %387 = vperm.xlu0 %636, %v384_v17  }
 0x1bd   : > { %v381_v18 = vpop.permute.xlu0 %380 }
 0x1be   : > { %v383_v20 = vmul.f32 %v381_v18, %v361_v10 }
 0x1c1   : > { %v388_v19 = vpop.permute.xlu0 %387 }
 0x1c2   : > { %v390_v21 = vmul.f32 %v531_v9, %v388_v19 }
 0x1c4   : > { %v391_v22 = vadd.f32 %v390_v21, %v383_v20 }
 0x1c6   : > { %392 = vst [vmem:[%s277_s7] sm:$0xff] %v391_v22 }
 0x1c7   : > { %736 = shalt.err (!%p733_p6)
}
 0x1c8   : > { %s737_s10 = scalar_lea.hbm %s406_s28, 128  ;;  %s741_s13 = scalar_lea.hbm %s1040_s4, 256 }
 0x1c9   : > { %p738_p9 = scmp.ne.s32.totalorder %s406_s28, %s737_s10  ;;  %p742_p11 = scmp.lt.s32.totalorder %s406_s28, %s1040_s4 }
 0x1ca   : > { %p743_p3 = scmp.lt.s32.totalorder %s741_s13, %s737_s10 }
 0x1cb   : > { %p739_p12 = pnand %p738_p9, %p930_p0 }
 0x1cc   : > { %p744_p1 = por %p743_p3, %p742_p11 }
 0x1cd   : > { %p740_p13 = pneg %p739_p12 }
 0x1cf   : > { %p745_p4 = pnand %p744_p1, %p740_p13 }
 0x1d1   : > { %748 = shalt.err (!%p745_p4)
}
 0x1d2   : > { %561 = dma.vmem_to_hbm [thread:$0]  (%p930_p0), %s409_s8, 128, %s406_s28, %s394_s5  }
 0x1d3 PF: > { %s420_s29 = sand.u32 1, %s791_s15   ;;  %p1056_p8 = scmp.ne.s32.totalorder %s1045_s24, 0 }
 0x1d4   : > { %s421_s30 = scalar_lea.sflag [#allocation4], %s420_s29 }
 0x1d5   : > { %p575_p5 = pnand %p521_p10, %p1056_p8 }
 0x1d7   : > { %p576_p7 = pneg %p575_p5 }
 0x1d9   : > { %786 = dma.done.wait (%p576_p7), %s421_s30, 128  }
 0x1da   : > { %788 = vsyncadd (%p576_p7), %s421_s30, 4294967168  ;;  %s23_s20 = sadd.s32 1, %s811_s20   ;;  %s1057_s21 = sld [smem:[#allocation14_spill]] }
 0x1db   : > { %p20_p2 = scmp.ge.s32.totalorder %s23_s20, 4   ;;  %s1058_s11 = sld [smem:[#allocation13_spill]] }
 0x1dc   : > { %s1059_s15 = smov %s795_s16  ;;  %s1060_s16 = smov %s799_s17 }
 0x1dd   : > { %s1062_s18 = smov %s807_s19  ;;  %22 = sbr.rel (!%p20_p2) target bundleno = 11 (0xb), region = 98 }
 0x1e0   : > { %s1061_s17 = smov %s1057_s21 }
 0x1e1   : > { %s1063_s19 = smov %s1058_s11 }
 0x1e2   :  { %426 = vsyncpa [#allocation3], 1 }
 0x1e3   :  { %428 = vsyncpa [#allocation3 + $0x1], 1 }
 0x1e4   :  { %429 = vsyncpa [#allocation6], 1 }
 0x1e5   :  { %431 = vsyncpa [#allocation6 + $0x1], 1 }
 0x1e6   :  { %432 = vsyncpa [#allocation4], 1 }
 0x1e7   :  { %434 = vsyncpa [#allocation4 + $0x1], 1 }

</bundles_post_ra>
